<compile_context>
chip_gen: v7x
topology: tpu7x:2x2x1
jax: 0.10.0
libtpu: 0.0.40
codegen_flags: <defaults>
</compile_context>

<pallas_src>
import math
import functools

import jax
import jax.numpy as jnp
from jax import lax
from jax.experimental import pallas as pl
from jax.experimental.pallas import tpu as pltpu


def _num_proj_kernel(src_ref, parts_ref, table_ref, o_ref, *, part_dim):
    """Produce one (out_dim, TM) output tile.

    src_ref:   (1, TM)        source scalars, lane-dense
    parts_ref: (P_pad, 1)     thresholds (+inf in padded rows -> never fire)
    table_ref: (D, 2*P_pad)   [ (weight@quantify)^T | (bias@quantify)^T ]
    o_ref:     (D, TM)        transposed, lane-dense output tile
    """
    s = src_ref[...]                                    # (1, TM) f32
    parts = parts_ref[...]                              # (P_pad, 1) f32
    p_pad = parts.shape[0]
    tm = s.shape[1]

    # proj_idx = #{p : s > parts[p]}  (== torch.sum(torch.gt(...), dim=1)),
    # clamped to the last valid row (see semantics note above).
    gt = (s > parts).astype(jnp.int32)                  # (P_pad, TM)
    idx = jnp.minimum(jnp.sum(gt, axis=0, keepdims=True), part_dim - 1)

    # One-hot selector; row gather AND `w*s + b` fused into one MXU matmul:
    #   out = [WQ^T | BQ^T] @ [onehot * s ; onehot]
    rows = lax.broadcasted_iota(jnp.int32, (p_pad, tm), 0)
    onehot = (rows == idx).astype(jnp.float32)          # (P_pad, TM)
    u = jnp.concatenate([onehot * s, onehot], axis=0)   # (2*P_pad, TM)

    out = jnp.dot(table_ref[...], u,
                  preferred_element_type=jnp.float32)   # (D, TM)
    o_ref[...] = out.astype(o_ref.dtype)


def make_num_proj_tables(proj_parts, weight, bias, quantify):
    """Fold `quantify` into the tables and pad; hoistable / precomputable."""
    part_dim, out_dim = weight.shape
    p_pad = max(8, pl.cdiv(part_dim, 8) * 8)

    wq = jnp.dot(weight.astype(jnp.float32), quantify.astype(jnp.float32),
                 precision=lax.Precision.HIGHEST)        # (P, D)
    bq = jnp.dot(bias.astype(jnp.float32), quantify.astype(jnp.float32),
                 precision=lax.Precision.HIGHEST)        # (P, D)

    table_t = jnp.zeros((out_dim, 2 * p_pad), jnp.float32)
    table_t = table_t.at[:, :part_dim].set(wq.T)
    table_t = table_t.at[:, p_pad:p_pad + part_dim].set(bq.T)

    parts_col = jnp.full((p_pad, 1), jnp.inf, dtype=jnp.float32)
    parts_col = parts_col.at[:part_dim, 0].set(proj_parts.astype(jnp.float32))
    return parts_col, table_t


def num_proj_apply(src, proj_parts, parts_col, table_t, part_dim, out_dim, *,
                   tm=None, tm_cap=8192, out_dtype=jnp.bfloat16,
                   transposed_output=False):
    """Run the kernel given pre-built tables."""
    batch, src_len = src.shape
    n = batch * src_len
    p_pad = parts_col.shape[0]

    # --- tile sizing -------------------------------------------------------
    if tm is None:
        # Big enough to amortize per-step overhead, small enough to keep
        # >= 2 grid steps (v7x has 2 TensorCores) once n >= ~1K.
        tm = min(int(tm_cap), max(512, ((n + 1) // 2 + 511) // 512 * 512))
    tm = max(128, ((int(tm) + 127) // 128) * 128)        # lane-aligned
    n_pad = pl.cdiv(n, tm) * tm

    src_flat = jnp.pad(src.reshape(1, n).astype(jnp.float32),
                       ((0, 0), (0, n_pad - n)))

    out_bytes = jnp.dtype(out_dtype).itemsize

    # --- VMEM budget (per tile, double-buffered I/O + temporaries) ---------
    per_buf = 8 * tm * 4 + out_dim * tm * out_bytes + (p_pad + out_dim) * 128 * 4
    temps = (4 * p_pad + out_dim + 8) * tm * 4
    vmem_limit = int(min(96 << 20, max(32 << 20, 2 * (2 * per_buf + temps))))

    cost = pl.CostEstimate(
        flops=2 * n_pad * out_dim * 2 * p_pad,
        transcendentals=0,
        bytes_accessed=n_pad * 4 + n_pad * out_dim * out_bytes
        + (p_pad + out_dim * 2 * p_pad) * 4,
    )

    kernel = functools.partial(_num_proj_kernel, part_dim=part_dim)

    out_t = pl.pallas_call(
        kernel,
        out_shape=jax.ShapeDtypeStruct((out_dim, n_pad), out_dtype),
        grid_spec=pltpu.PrefetchScalarGridSpec(
            num_scalar_prefetch=0,
            grid=(n_pad // tm,),
            in_specs=[
                pl.BlockSpec((1, tm), lambda i: (0, i)),                 # src
                pl.BlockSpec((p_pad, 1), lambda i: (0, 0)),              # parts
                pl.BlockSpec((out_dim, 2 * p_pad), lambda i: (0, 0)),    # table
            ],
            out_specs=pl.BlockSpec((out_dim, tm), lambda i: (0, i)),
        ),
        compiler_params=pltpu.CompilerParams(
            dimension_semantics=("parallel",),
            vmem_limit_bytes=vmem_limit),
        cost_estimate=cost,
    )(src_flat, parts_col, table_t)

    if transposed_output:
        # Lane-dense layout, no XLA transpose; consumer absorbs it (or folds
        # it into its own dot_general dimension_numbers).
        return out_t[:, :n].reshape(out_dim, batch, src_len)
    # PyTorch-layout result; the transpose is an extra XLA pass over the
    # output -- prefer transposed_output=True when downstream allows it.
    return out_t[:, :n].T.reshape(batch, src_len, out_dim)


def num_proj_layer(src, proj_parts, weight, bias, quantify, *, tm=None,
                   tm_cap=8192, out_dtype=jnp.bfloat16,
                   transposed_output=False):
    """Convenience wrapper: table prep + kernel.  Mirror of NumProjLayer.forward."""
    part_dim, out_dim = weight.shape
    parts_col, table_t = make_num_proj_tables(proj_parts, weight, bias, quantify)
    return num_proj_apply(src, proj_parts, parts_col, table_t, part_dim,
                          out_dim, tm=tm, tm_cap=tm_cap, out_dtype=out_dtype,
                          transposed_output=transposed_output)


def num_proj_reference(src, proj_parts, weight, bias, quantify):
    """Pure-JAX mirror of the PyTorch forward (with the same last-row clamp)."""
    batch, src_len = src.shape
    n = batch * src_len
    part_dim, out_dim = weight.shape
    s = src.reshape(n, 1).astype(jnp.float32)
    idx = jnp.sum(s > proj_parts.reshape(1, part_dim), axis=1)
    idx = jnp.minimum(idx, part_dim - 1)
    projected = weight[idx] * s + bias[idx]
    out = jnp.dot(projected, quantify.astype(jnp.float32),
                  precision=lax.Precision.HIGHEST)
    return out.reshape(batch, src_len, out_dim)


if __name__ == "__main__":
    # f32-accurate matmuls everywhere (reference, table fold, in-kernel dot)
    # so the f32 check can stay tight.
    jax.config.update("jax_default_matmul_precision", "highest")

    batch, src_len = 2, 333          # n = 666 -> padding + a 2-step grid at tm=512
    part_dim, out_dim = 5, 32

    key = jax.random.PRNGKey(0)
    k_src, k_w, k_b, k_q = jax.random.split(key, 4)

    # Integer-valued thresholds (the module stores proj_parts as .long());
    # the last one is effectively +inf so every bucket is exercised but the
    # clamp never has to fire.
    proj_parts = jnp.array([1.0, 2.0, 4.0, 8.0, 1e9], dtype=jnp.float32)

    bound = 1.0 / math.sqrt(out_dim)
    weight = jax.random.uniform(k_w, (part_dim, out_dim), jnp.float32, -bound, bound)
    bias = jax.random.uniform(k_b, (part_dim, out_dim), jnp.float32, -bound, bound)
    quantify = jax.random.uniform(k_q, (out_dim, out_dim), jnp.float32, -bound, bound)
    src = jax.random.uniform(k_src, (batch, src_len), jnp.float32, 0.0, 10.0)

    ref = num_proj_reference(src, proj_parts, weight, bias, quantify)

    # 1) f32 output, explicit small tile -> multi-step grid + padding path.
    f32_fn = jax.jit(functools.partial(num_proj_layer, tm=512,
                                       out_dtype=jnp.float32))
    out_f32 = jax.block_until_ready(f32_fn(src, proj_parts, weight, bias, quantify))
    assert out_f32.shape == (batch, src_len, out_dim)
    assert jnp.allclose(out_f32, ref, atol=1e-3, rtol=1e-3), float(
        jnp.max(jnp.abs(out_f32 - ref)))

    # 2) Default perf config: auto tile, bf16 output (math stays f32).
    bf16_fn = jax.jit(functools.partial(num_proj_layer, out_dtype=jnp.bfloat16))
    out_bf16 = jax.block_until_ready(bf16_fn(src, proj_parts, weight, bias, quantify))
    assert out_bf16.dtype == jnp.bfloat16
    assert jnp.allclose(out_bf16.astype(jnp.float32), ref, atol=5e-2, rtol=2e-2), float(
        jnp.max(jnp.abs(out_bf16.astype(jnp.float32) - ref)))

    # 3) Transposed output (no wrapper-side XLA transpose at all).
    t_fn = jax.jit(functools.partial(num_proj_layer, out_dtype=jnp.float32,
                                     transposed_output=True))
    out_t = jax.block_until_ready(t_fn(src, proj_parts, weight, bias, quantify))
    assert out_t.shape == (out_dim, batch, src_len)
    assert jnp.allclose(out_t, jnp.transpose(ref, (2, 0, 1)),
                        atol=1e-3, rtol=1e-3)

    print("KERNEL_OK")
</pallas_src>

<mosaic_0001>
module attributes {stable_mosaic.version = 11 : i64} {
  func.func @_num_proj_kernel(%arg0: i32, %arg1: memref<1x512xf32, #tpu.memory_space<vmem>>, %arg2: memref<8x1xf32, #tpu.memory_space<vmem>>, %arg3: memref<32x16xf32, #tpu.memory_space<vmem>>, %arg4: memref<32x512xf32, #tpu.memory_space<vmem>>) attributes {dimension_semantics = [#tpu.dimension_semantics<parallel>], iteration_bounds = array<i64: 2>, scalar_prefetch = 0 : i64, scratch_operands = 0 : i64, tpu.core_type = #tpu.core_type<tc>, window_params = [{transform_indices = @transform_0, window_bounds = array<i64: 1, 512>}, {pipeline_mode = #tpu.pipeline_mode<synchronous>, transform_indices = @transform_1, window_bounds = array<i64: 8, 1>}, {pipeline_mode = #tpu.pipeline_mode<synchronous>, transform_indices = @transform_2, window_bounds = array<i64: 32, 16>}, {transform_indices = @transform_3, window_bounds = array<i64: 32, 512>}]} {
    %c0 = arith.constant 0 : index
    %c0_0 = arith.constant 0 : index
    %0 = vector.load %arg1[%c0, %c0_0] : memref<1x512xf32, #tpu.memory_space<vmem>>, vector<1x512xf32>
    %c0_1 = arith.constant 0 : index
    %c0_2 = arith.constant 0 : index
    %1 = vector.load %arg2[%c0_1, %c0_2] : memref<8x1xf32, #tpu.memory_space<vmem>>, vector<8x1xf32>
    %2 = vector.broadcast %0 : vector<1x512xf32> to vector<8x512xf32>
    %3 = vector.broadcast %1 : vector<8x1xf32> to vector<8x512xf32>
    %4 = arith.cmpf ogt, %2, %3 : vector<8x512xf32>
    %5 = arith.extui %4 : vector<8x512xi1> to vector<8x512xi32>
    %cst = arith.constant dense<0> : vector<512xi32>
    %6 = vector.multi_reduction <add>, %5, %cst [0] : vector<8x512xi32> to vector<512xi32>
    %7 = vector.shape_cast %6 : vector<512xi32> to vector<1x512xi32>
    %c4_i32 = arith.constant 4 : i32
    %8 = vector.broadcast %c4_i32 : i32 to vector<1x512xi32>
    %9 = arith.minsi %7, %8 : vector<1x512xi32>
    %10 = tpu.iota {dimensions = array<i32: 0>} : vector<8x512xi32>
    %11 = vector.broadcast %9 : vector<1x512xi32> to vector<8x512xi32>
    %12 = arith.cmpi eq, %10, %11 : vector<8x512xi32>
    %13 = arith.extui %12 : vector<8x512xi1> to vector<8x512xi32>
    %14 = arith.sitofp %13 : vector<8x512xi32> to vector<8x512xf32>
    %15 = vector.broadcast %0 : vector<1x512xf32> to vector<8x512xf32>
    %16 = arith.mulf %14, %15 : vector<8x512xf32>
    %17 = tpu.concatenate %16, %14 in 0 : vector<8x512xf32>, vector<8x512xf32> -> vector<16x512xf32>
    %c0_3 = arith.constant 0 : index
    %c0_4 = arith.constant 0 : index
    %18 = vector.load %arg3[%c0_3, %c0_4] : memref<32x16xf32, #tpu.memory_space<vmem>>, vector<32x16xf32>
    %cst_5 = arith.constant dense<0.000000e+00> : vector<32x512xf32>
    %19 = tpu.matmul %18, %17, %cst_5 {dimension_numbers = #tpu.dot_dimension_numbers<[1], [0], [0], [1], [0, 0, 1, 1], [], []>, precision = #tpu.contract_precision<fp32>} : vector<32x16xf32>, vector<16x512xf32>, vector<32x512xf32> -> vector<32x512xf32>
    %c0_6 = arith.constant 0 : index
    %c0_7 = arith.constant 0 : index
    %20 = vector.load %arg4[%c0_6, %c0_7] : memref<32x512xf32, #tpu.memory_space<vmem>>, vector<32x512xf32>
    tpu.vector_store %arg4[%c0_6, %c0_7], %19 {strides = array<i32>} : memref<32x512xf32, #tpu.memory_space<vmem>>, vector<32x512xf32>,
    return
  }
  func.func @transform_0(%arg0: i32) -> (i32, i32) {
    %c0_i32 = arith.constant 0 : i32
    %c0_i32_0 = arith.constant 0 : i32
    return %c0_i32, %arg0 : i32, i32
  }
  func.func @transform_1(%arg0: i32) -> (i32, i32) {
    %c0_i32 = arith.constant 0 : i32
    %c0_i32_0 = arith.constant 0 : i32
    %c0_i32_1 = arith.constant 0 : i32
    return %c0_i32, %c0_i32_0 : i32, i32
  }
  func.func @transform_2(%arg0: i32) -> (i32, i32) {
    %c0_i32 = arith.constant 0 : i32
    %c0_i32_0 = arith.constant 0 : i32
    %c0_i32_1 = arith.constant 0 : i32
    return %c0_i32, %c0_i32_0 : i32, i32
  }
  func.func @transform_3(%arg0: i32) -> (i32, i32) {
    %c0_i32 = arith.constant 0 : i32
    %c0_i32_0 = arith.constant 0 : i32
    return %c0_i32, %arg0 : i32, i32
  }
}

</mosaic_0001>

<bundles_post_ra>
// kernel: num_proj_layer.1
= control target key start
LH: loop header
LB: loop body
LE: loop exit
PB: predicated region body
PF: predicated region fallthrough
CT: control target
= control target key end

     0   :  { %s1910_s12 = smov 0   ;;  %s1912_s13 = smov 0   ;;  %s2334_s0 = inlined_call_operand.vmem [shape: f32[1,1024], index: 0, kind: input, shape index: {}]   ;;  %s2335_s1 = inlined_call_operand.vmem [shape: f32[8,1], index: 1, kind: input, shape index: {}]   ;;  %s2336_s2 = inlined_call_operand.vmem [shape: f32[32,16], index: 2, kind: input, shape index: {}]   ;;  %s2337_s3 = inlined_call_operand.vmem [shape: f32[32,1024], index: 3, kind: output, shape index: {}]  }
   0x1   :  { %s1914_s14 = smov 0  }
   0x2 LB: > { %s1923_s15 = sadd.s32 4294967295, %s1884_s14   ;;  %s1925_s16 = sadd.s32 1, %s1884_s14   ;;  %s1884_s14 = sphi %s1914_s14, %s2349_s14   ;;  %s1880_s13 = sphi %s1912_s13, %s2348_s13   ;;  %s1876_s12 = sphi %s1910_s12, %s2347_s12  }
   0x3   : > { %s85_s17 = ssub.s32 %s1884_s14, %s1925_s16  ;;  %s88_s18 = sadd.s32 1, %s1880_s13 }
   0x4   : > { %p86_p0 = scmp.eq.s32.totalorder %s85_s17, 0  ;;  %p98_p1 = scmp.ne.s32.totalorder %s1880_s13, %s1876_s12 }
   0x5   : > { %p99_p2 = scmp.eq.s32.totalorder %s1923_s15, 1  ;;  %p1668_p3 = scmp.ge.s32.totalorder %s1884_s14, 1 }
   0x6   : > { %s1933_s19 = scalar_select %p86_p0, %s1880_s13, %s88_s18  }
   0x7   : > { %p1935_p4 = por %p99_p2, %p98_p1  ;;  %p137_p5 = scmp.lt.s32.totalorder %s1884_s14, 3 }
   0x9   : > { %p138_p6 = pnand %p1668_p3, %p137_p5 }
   0xa   : > { %v166_v0 = vld [vmem:[%s2335_s1] sm:$0xff] (!%p138_p6)  ;;  %v1886_v1 = vmov (!%p138_p6), 0   ;;  %v1887_v2 = vmov (!%p138_p6), 0.0   ;;  %s1670_s23 = sshll.u32 (!%p138_p6), %s1923_s15, 2  ;;  %v168_v3 = vlaneseq (!%p138_p6)  ;;  %vm255_vm0 = vcmask (!%p138_p6), 130048   ;;  %v252_v12 = vld [vmem:[%s2336_s2 + $0x8] sm:$0xff] (!%p138_p6) }
   0xb   : > { %141 = sbr.rel (%p138_p6) target bundleno = 483 (0x1e3), region = 32  ;;  %1861 = vset.pattern.permute.xlu0 (!%p138_p6), %v1886_v1  ;;  %336 = vmatprep.mubr.f32.mxu0 (!%p138_p6), %v1887_v2  ;;  %p160_p7 = scmp.lt.s32.totalorder (!%p138_p6), %s1670_s23, 7  ;;  %v251_v5 = vld [vmem:[%s2336_s2] sm:$0xff] (!%p138_p6)  ;;  %v260_v18 = vsel (!%p138_p6), %vm255_vm0, %v252_v12, 0  ;;  %v253_v30 = vld [vmem:[%s2336_s2 + $0x10] sm:$0xff] (!%p138_p6)  ;;  %v254_v42 = vld [vmem:[%s2336_s2 + $0x18] sm:$0xff] (!%p138_p6) }
   0xc   : > { %190 = vperm.xlu0 (!%p138_p6), %1861, %v166_v0   ;;  %974 = vmatprep.mubr.f32.mxu1 (!%p138_p6), %v1887_v2  ;;  %v1945_v4 = vshrl.u32 (!%p138_p6), %v168_v3, 7  ;;  %v257_v11 = vsel (!%p138_p6), %vm255_vm0, %v251_v5, 0  ;;  %v1975_v21 = vand.u32 (!%p138_p6), 4294901760, %v260_v18  ;;  %v263_v37 = vsel (!%p138_p6), %vm255_vm0, %v253_v30, 0  ;;  %s156_s8 = sand.u32 (!%p138_p6), 1, %s1876_s12  }
   0xd   : > { %v1963_v14 = vand.u32 (!%p138_p6), 4294901760, %v257_v11  ;;  %v1999_v49 = vand.u32 (!%p138_p6), 4294901760, %v263_v37  ;;  %v2002_v50 = vsel (!%p138_p6), %vm255_vm0, %v254_v42, 0  ;;  %vm1888_vm13 = vmmov (!%p138_p6), 1   ;;  %s1669_s9 = sshll.u32 (!%p138_p6), %s156_s8, 7 }
   0xe   : > { %v170_v6 = vsub.s32 (!%p138_p6), 0, %v1945_v4  ;;  %v174_v7 = vsub.s32 (!%p138_p6), 1, %v1945_v4  ;;  %v178_v8 = vsub.s32 (!%p138_p6), 2, %v1945_v4  ;;  %v182_v9 = vsub.s32 (!%p138_p6), 3, %v1945_v4  ;;  %s2284_s10 = scalar_lea.vmem (!%p138_p6), [#allocation2], %s1669_s9 }
   0xf   : > { %v1973_v20 = vsub.f32 (!%p138_p6), %v257_v11, %v1963_v14  ;;  %v1988_v36 = vsub.f32 (!%p138_p6), %v260_v18, %v1975_v21  ;;  %v2009_v61 = vsub.f32 (!%p138_p6), %v263_v37, %v1999_v49  ;;  %v2012_v62 = vand.u32 (!%p138_p6), 4294901760, %v2002_v50 }
  0x11   : > { %v1985_v35 = vand.u32 (!%p138_p6), 4294901760, %v1973_v20  ;;  %v1997_v48 = vand.u32 (!%p138_p6), 4294901760, %v1988_v36 }
  0x12   : > { %s2351_s23 = smov (!%p160_p7, %s1670_s23), 7  ;;  %s1692_s11 = sshll.u32 (%p1935_p4), %s1923_s15, 5 }
  0x13   : > { %s162_s26 = scalar_lea.vmem %s2334_s0, %s2351_s23  ;;  %v340_v47 = vsub.f32 %v1973_v20, %v1985_v35  ;;  %v351_v60 = vsub.f32 %v1988_v36, %v1997_v48  ;;  %s1569_s17 = scalar_lea.vmem (%p1935_p4), %s2337_s3, %s1692_s11 }
  0x14   : > { %v165_v10 = vld [vmem:[%s162_s26] sm:$0xf] }
  0x15   : > { %v1961_v13 = vrot.slane %v165_v10, %v170_v6  ;;  %v1965_v15 = vrot.slane %v165_v10, %v174_v7  ;;  %v1967_v16 = vrot.slane %v165_v10, %v178_v8  ;;  %v1969_v17 = vrot.slane %v165_v10, %v182_v9 }
  0x16   : > { %v2004_v59 = vand.u32 4294901760, %v340_v47 }
  0x8b   : > { %v191_v19 = vpop.permute.xlu0 %190 }
  0x8c   : > { %vm193_vm1 = vcmp.gt.f32.partialorder %v1961_v13, %v191_v19  ;;  %vm194_vm2 = vcmp.gt.f32.partialorder %v1965_v15, %v191_v19  ;;  %vm195_vm3 = vcmp.gt.f32.partialorder %v1967_v16, %v191_v19  ;;  %vm196_vm4 = vcmp.gt.f32.partialorder %v1969_v17, %v191_v19 }
  0x8d   : > { %v197_v22 = vsel %vm193_vm1, 1, %v1886_v1  ;;  %v198_v23 = vsel %vm194_vm2, 1, %v1886_v1  ;;  %v199_v24 = vsel %vm195_vm3, 1, %v1886_v1  ;;  %v200_v25 = vsel %vm196_vm4, 1, %v1886_v1 }
  0x8e   : > { %v201_v26 = vrot.slane %v197_v22, 4  ;;  %v207_v27 = vrot.slane %v198_v23, 4  ;;  %v213_v28 = vrot.slane %v199_v24, 4  ;;  %v219_v29 = vrot.slane %v200_v25, 4 }
  0x90   : > { %v202_v31 = vadd.s32 %v201_v26, %v197_v22  ;;  %v208_v32 = vadd.s32 %v207_v27, %v198_v23  ;;  %v214_v33 = vadd.s32 %v213_v28, %v199_v24  ;;  %v220_v34 = vadd.s32 %v219_v29, %v200_v25 }
  0x91   : > { %v1889_v29 = vmov 1.0  }
  0x92   : > { %v203_v38 = vrot.slane %v202_v31, 2  ;;  %v209_v39 = vrot.slane %v208_v32, 2  ;;  %v215_v40 = vrot.slane %v214_v33, 2  ;;  %v221_v41 = vrot.slane %v220_v34, 2 }
  0x94   : > { %v204_v43 = vadd.s32 %v203_v38, %v202_v31  ;;  %v210_v44 = vadd.s32 %v209_v39, %v208_v32  ;;  %v216_v45 = vadd.s32 %v215_v40, %v214_v33  ;;  %v222_v46 = vadd.s32 %v221_v41, %v220_v34 }
  0x95   : > { %v2082_v41 = vand.u32 4294901760, %v2009_v61 }
  0x96   : > { %v211_v51 = vrot.slane %v210_v44, 1  ;;  %v223_v52 = vrot.slane %v222_v46, 1  ;;  %v205_v53 = vrot.slane %v204_v43, 1  ;;  %v217_v54 = vrot.slane %v216_v45, 1 }
  0x98   : > { %v212_v55 = vadd.s32 %v211_v51, %v210_v44  ;;  %v224_v56 = vadd.s32 %v223_v52, %v222_v46  ;;  %v206_v57 = vadd.s32 %v205_v53, %v204_v43  ;;  %v218_v58 = vadd.s32 %v217_v54, %v216_v45 }
  0x99   : > { %v2105_v46 = vsub.f32 %v2002_v50, %v2012_v62 }
  0x9a   : > { %vm227_vm5 = vcmp.lt.s32.totalorder %v212_v55, 4  ;;  %vm231_vm6 = vcmp.lt.s32.totalorder %v224_v56, 4  ;;  %vm225_vm7 = vcmp.lt.s32.totalorder %v206_v57, 4  ;;  %vm229_vm8 = vcmp.lt.s32.totalorder %v218_v58, 4 }
  0x9b   : > { %v228_v63 = vsel %vm227_vm5, %v212_v55, 4  ;;  %v232_v0 = vsel %vm231_vm6, %v224_v56, 4  ;;  %v226_v1 = vsel %vm225_vm7, %v206_v57, 4  ;;  %v230_v3 = vsel %vm229_vm8, %v218_v58, 4 }
  0x9c   : > { %vm236_vm9 = vcmp.eq.s32.totalorder %v1945_v4, %v228_v63  ;;  %vm238_vm10 = vcmp.eq.s32.totalorder %v1945_v4, %v232_v0  ;;  %vm235_vm11 = vcmp.eq.s32.totalorder %v1945_v4, %v226_v1  ;;  %vm237_vm12 = vcmp.eq.s32.totalorder %v1945_v4, %v230_v3 }
  0x9d   : > { %v1672_v5 = vsel %vm236_vm9, 1.0, %v1887_v2  ;;  %v1674_v6 = vsel %vm238_vm10, 1.0, %v1887_v2  ;;  %v1671_v7 = vsel %vm235_vm11, 1.0, %v1887_v2  ;;  %v1673_v8 = vsel %vm237_vm12, 1.0, %v1887_v2  ;;  %vm2047_vm14 = vmpackc.low %vm236_vm9, %vm1888_vm13 }
  0x9e   : > { %v248_v9 = vmul.f32 %v1672_v5, %v1965_v15  ;;  %v2031_v10 = vsub.f32 %v1672_v5, %v1672_v5  ;;  %v250_v11 = vmul.f32 %v1674_v6, %v1969_v17  ;;  %v2034_v12 = vsub.f32 %v1674_v6, %v1674_v6  ;;  %vm2062_vm15 = vmpackc.low %vm238_vm10, %vm1888_vm13 }
  0x9f   : > { %v247_v18 = vmul.f32 %v1671_v7, %v1961_v13  ;;  %v2037_v19 = vsub.f32 %v1671_v7, %v1671_v7  ;;  %v249_v22 = vmul.f32 %v1673_v8, %v1967_v16  ;;  %v2040_v23 = vsub.f32 %v1673_v8, %v1673_v8  ;;  %vm2073_vm0 = vmpackc.low %vm235_vm11, %vm1888_vm13 }
  0xa0   : > { %v268_v24 = vand.u32 4294901760, %v248_v9  ;;  %v906_v25 = vand.u32 4294901760, %v250_v11  ;;  %v395_v26 = vand.u32 4294901760, %v2031_v10  ;;  %v1033_v15 = vand.u32 4294901760, %v2034_v12  ;;  %vm2093_vm1 = vmpackc.low %vm237_vm12, %vm1888_vm13 }
  0xa1   : > { %v270_v13 = vand.u32 4294901760, %v247_v18  ;;  %v401_v27 = vand.u32 4294901760, %v2037_v19  ;;  %v908_v16 = vand.u32 4294901760, %v249_v22  ;;  %v1039_v28 = vand.u32 4294901760, %v2040_v23 }
  0xa2   : > { %v2053_v30 = vpack.c.bf16 %v1889_v29, %v268_v24  ;;  %v2055_v31 = vsub.f32 %v248_v9, %v268_v24  ;;  %v2057_v32 = vpack.c.bf16 %v1889_v29, %v906_v25  ;;  %v2066_v34 = vsub.f32 %v250_v11, %v906_v25 }
  0xa3   : > { %v2068_v37 = vpack.c.bf16 %v1889_v29, %v270_v13  ;;  %v2077_v39 = vsub.f32 %v247_v18, %v270_v13  ;;  %v2079_v40 = vpack.c.bf16 %v1889_v29, %v908_v16  ;;  %v2097_v43 = vsub.f32 %v249_v22, %v908_v16 }
  0xa4   : > { %1695 = vmatprep.subr.msk.bf16.mxu0 %vm2047_vm14, %v2053_v30  ;;  %1725 = vmatprep.subr.msk.bf16.mxu1 %vm2062_vm15, %v2057_v32  ;;  %v383_v44 = vand.u32 4294901760, %v2055_v31  ;;  %v396_v45 = vsub.f32 %v2031_v10, %v395_v26  ;;  %v402_v47 = vsub.f32 %v2037_v19, %v401_v27  ;;  %v1021_v51 = vand.u32 4294901760, %v2066_v34 }
  0xa5   : > { %1698 = vmatpush1.bf16.msk.msra.mxu0 %vm2073_vm0, %v2068_v37  ;;  %v389_v4 = vand.u32 4294901760, %v2077_v39  ;;  %1728 = vmatpush1.bf16.msk.msra.mxu1 %vm2093_vm1, %v2079_v40  ;;  %v1034_v50 = vsub.f32 %v2034_v12, %v1033_v15  ;;  %v1027_v52 = vand.u32 4294901760, %v2097_v43  ;;  %v1040_v53 = vsub.f32 %v2040_v23, %v1039_v28 }
  0xa6   : > { %v384_v54 = vsub.f32 %v2055_v31, %v383_v44  ;;  %v352_v55 = vand.u32 4294901760, %v351_v60  ;;  %v1022_v56 = vsub.f32 %v2066_v34, %v1021_v51  ;;  %v362_v58 = vsub.f32 %v2009_v61, %v2082_v41 }
  0xa7   : > { %v390_v57 = vsub.f32 %v2077_v39, %v389_v4  ;;  %v397_v0 = vand.u32 4294901760, %v396_v45  ;;  %v1028_v60 = vsub.f32 %v2097_v43, %v1027_v52  ;;  %v2145_v1 = vand.u32 4294901760, %v2105_v46 }
  0xa8   : > { %342 = vmatmul.mubr.f32.vlgmr.msra.gmra.mrb[0].mxu0 %v2004_v59  ;;  %980 = vmatmul.mubr.f32.vlgmr.msra.gmra.mrb[0].mxu1 %v2004_v59  ;;  %v385_v63 = vand.u32 4294901760, %v384_v54  ;;  %v1023_v3 = vand.u32 4294901760, %v1022_v56  ;;  %v1035_v5 = vand.u32 4294901760, %v1034_v50  ;;  %v403_v7 = vand.u32 4294901760, %v402_v47 }
  0xa9   : > { %347 = vmatprep.mubr.f32.mxu0 %v1887_v2  ;;  %985 = vmatprep.mubr.f32.mxu1 %v1887_v2  ;;  %v391_v6 = vand.u32 4294901760, %v390_v57  ;;  %v1029_v9 = vand.u32 4294901760, %v1028_v60  ;;  %v1041_v59 = vand.u32 4294901760, %v1040_v53  ;;  %v1703_v24 = vpack.c.bf16 %v2031_v10, %v2055_v31 }
  0xaa   : > { %v1699_v8 = vpack.c.bf16 %v397_v0, %v385_v63  ;;  %v1729_v11 = vpack.c.bf16 %v1035_v5, %v1023_v3  ;;  %v1733_v25 = vpack.c.bf16 %v2034_v12, %v2066_v34  ;;  %v363_v13 = vand.u32 4294901760, %v362_v58 }
  0xab   : > { %v1701_v18 = vpack.c.bf16 %v403_v7, %v391_v6  ;;  %v1731_v22 = vpack.c.bf16 %v1041_v59, %v1029_v9  ;;  %v373_v16 = vsub.f32 %v2105_v46, %v2145_v1  ;;  %v1705_v45 = vpack.c.bf16 %v2037_v19, %v2077_v39 }
  0xac   : > { %353 = vmatmul.mubr.f32.gmra.mrb[2].mxu0 %v352_v55  ;;  %1700 = vmatprep.subr.bf16.mxu0 %v1699_v8  ;;  %v1735_v47 = vpack.c.bf16 %v2040_v23, %v2097_v43  ;;  %v1713_v50 = vpack.c.bf16 %v395_v26, %v383_v44  ;;  %v1743_v53 = vpack.c.bf16 %v1033_v15, %v1021_v51 }
  0xad   : > { %991 = vmatmul.mubr.f32.gmra.mrb[2].mxu1 %v352_v55  ;;  %1730 = vmatprep.subr.bf16.mxu1 %v1729_v11  ;;  %v374_v29 = vand.u32 4294901760, %v373_v16 }
  0xae   : > { %1702 = vmatpush1.bf16.msra.mxu0 %v1701_v18  ;;  %1732 = vmatpush1.bf16.msra.mxu1 %v1731_v22 }
  0xaf   : > { %1704 = vmatprep.subr.bf16.mxu0 %v1703_v24  ;;  %1734 = vmatprep.subr.bf16.mxu1 %v1733_v25 }
  0xb0   : > { %358 = vmatprep.mubr.f32.mxu0 %v1887_v2  ;;  %996 = vmatprep.mubr.f32.mxu1 %v1887_v2 }
  0xb1   : > { %364 = vmatmul.mubr.f32.gmra.mrb[4].mxu0 %v363_v13  ;;  %1002 = vmatmul.mubr.f32.gmra.mrb[4].mxu1 %v363_v13 }
  0xb2   : > { %369 = vmatprep.mubr.f32.mxu0 %v1887_v2  ;;  %1007 = vmatprep.mubr.f32.mxu1 %v1887_v2 }
  0xb5   : > { %375 = vmatmul.mubr.f32.gmra.mrb[6].mxu0 %v374_v29  ;;  %1013 = vmatmul.mubr.f32.gmra.mrb[6].mxu1 %v374_v29 }
  0xb6   : > { %465 = vmatprep.mubr.f32.mxu0 %v1887_v2  ;;  %1103 = vmatprep.mubr.f32.mxu1 %v1887_v2 }
  0xb9   : > { %467 = vmatmul.mubr.f32.vlgmr.msra.gmra.mrb[0].mxu0 %v1963_v14  ;;  %1105 = vmatmul.mubr.f32.vlgmr.msra.gmra.mrb[0].mxu1 %v1963_v14 }
  0xba   : > { %1706 = vmatpush1.bf16.msra.mxu0 %v1705_v45  ;;  %1736 = vmatpush1.bf16.msra.mxu1 %v1735_v47 }
  0xbb   : > { %1709 = vmatprep.subr.msk.bf16.mxu0 %vm2047_vm14, %v2053_v30  ;;  %1739 = vmatprep.subr.msk.bf16.mxu1 %vm2062_vm15, %v2057_v32 }
  0xbc   : > { %472 = vmatprep.mubr.f32.mxu0 %v1887_v2  ;;  %1110 = vmatprep.mubr.f32.mxu1 %v1887_v2 }
  0xbd   : > { %474 = vmatmul.mubr.f32.gmra.mrb[2].mxu0 %v1975_v21  ;;  %1112 = vmatmul.mubr.f32.gmra.mrb[2].mxu1 %v1975_v21 }
  0xbe   : > { %479 = vmatprep.mubr.f32.mxu0 %v1887_v2  ;;  %1117 = vmatprep.mubr.f32.mxu1 %v1887_v2 }
  0xc1   : > { %481 = vmatmul.mubr.f32.gmra.mrb[4].mxu0 %v1999_v49  ;;  %1119 = vmatmul.mubr.f32.gmra.mrb[4].mxu1 %v1999_v49 }
  0xc2   : > { %486 = vmatprep.mubr.f32.mxu0 %v1887_v2  ;;  %1124 = vmatprep.mubr.f32.mxu1 %v1887_v2 }
  0xc5   : > { %488 = vmatmul.mubr.f32.gmra.mrb[6].mxu0 %v2012_v62  ;;  %1126 = vmatmul.mubr.f32.gmra.mrb[6].mxu1 %v2012_v62 }
  0xc6   : > { %566 = vmatprep.mubr.f32.mxu0 %v1887_v2  ;;  %1204 = vmatprep.mubr.f32.mxu1 %v1887_v2 }
  0xc9   : > { %569 = vmatmul.mubr.f32.vlgmr.msra.gmra.mrb[0].mxu0 %v1973_v20  ;;  %1207 = vmatmul.mubr.f32.vlgmr.msra.gmra.mrb[0].mxu1 %v1973_v20  ;;  %v1715_v20 = vpack.c.bf16 %v401_v27, %v389_v4 }
  0xca   : > { %1712 = vmatpush1.bf16.msk.msra.mxu0 %vm2073_vm0, %v2068_v37  ;;  %1742 = vmatpush1.bf16.msk.msra.mxu1 %vm2093_vm1, %v2079_v40 }
  0xcb   : > { %1714 = vmatprep.subr.bf16.mxu0 %v1713_v50  ;;  %1744 = vmatprep.subr.bf16.mxu1 %v1743_v53 }
  0xcc   : > { %574 = vmatprep.mubr.f32.mxu0 %v1887_v2  ;;  %1212 = vmatprep.mubr.f32.mxu1 %v1887_v2 }
  0xcd   : > { %577 = vmatmul.mubr.f32.gmra.mrb[2].mxu0 %v1988_v36  ;;  %1215 = vmatmul.mubr.f32.gmra.mrb[2].mxu1 %v1988_v36  ;;  %v1745_v36 = vpack.c.bf16 %v1039_v28, %v1027_v52 }
  0xce   : > { %582 = vmatprep.mubr.f32.mxu0 %v1887_v2  ;;  %1220 = vmatprep.mubr.f32.mxu1 %v1887_v2 }
  0xd1   : > { %585 = vmatmul.mubr.f32.gmra.mrb[4].mxu0 %v2009_v61  ;;  %1223 = vmatmul.mubr.f32.gmra.mrb[4].mxu1 %v2009_v61 }
  0xd2   : > { %590 = vmatprep.mubr.f32.mxu0 %v1887_v2  ;;  %1228 = vmatprep.mubr.f32.mxu1 %v1887_v2 }
  0xd5   : > { %593 = vmatmul.mubr.f32.gmra.mrb[6].mxu0 %v2105_v46  ;;  %1231 = vmatmul.mubr.f32.gmra.mrb[6].mxu1 %v2105_v46 }
  0xd6   : > { %667 = vmatprep.mubr.f32.mxu0 %v1887_v2  ;;  %1305 = vmatprep.mubr.f32.mxu1 %v1887_v2 }
  0xd9   : > { %671 = vmatmul.mubr.f32.vlgmr.msra.gmra.mrb[0].mxu0 %v1985_v35  ;;  %1309 = vmatmul.mubr.f32.vlgmr.msra.gmra.mrb[0].mxu1 %v1985_v35 }
  0xda   : > { %1716 = vmatpush1.bf16.msra.mxu0 %v1715_v20  ;;  %1746 = vmatpush1.bf16.msra.mxu1 %v1745_v36 }
  0xdb   : > { %1719 = vmatprep.subr.msk.bf16.mxu0 %vm2047_vm14, %v2053_v30  ;;  %1749 = vmatprep.subr.msk.bf16.mxu1 %vm2062_vm15, %v2057_v32 }
  0xdc   : > { %676 = vmatprep.mubr.f32.mxu0 %v1887_v2  ;;  %1314 = vmatprep.mubr.f32.mxu1 %v1887_v2 }
  0xdd   : > { %680 = vmatmul.mubr.f32.gmra.mrb[2].mxu0 %v1997_v48  ;;  %1318 = vmatmul.mubr.f32.gmra.mrb[2].mxu1 %v1997_v48 }
  0xde   : > { %685 = vmatprep.mubr.f32.mxu0 %v1887_v2  ;;  %1323 = vmatprep.mubr.f32.mxu1 %v1887_v2 }
  0xe1   : > { %689 = vmatmul.mubr.f32.gmra.mrb[4].mxu0 %v2082_v41  ;;  %1327 = vmatmul.mubr.f32.gmra.mrb[4].mxu1 %v2082_v41 }
  0xe2   : > { %694 = vmatprep.mubr.f32.mxu0 %v1887_v2  ;;  %1332 = vmatprep.mubr.f32.mxu1 %v1887_v2 }
  0xe5   : > { %698 = vmatmul.mubr.f32.gmra.mrb[6].mxu0 %v2145_v1  ;;  %1336 = vmatmul.mubr.f32.gmra.mrb[6].mxu1 %v2145_v1 }
  0xe6   : > { %780 = vmatprep.mubr.f32.mxu0 %v1887_v2  ;;  %1418 = vmatprep.mubr.f32.mxu1 %v1887_v2 }
  0xe9   : > { %782 = vmatmul.mubr.f32.vlgmr.msra.gmra.mrb[0].mxu0 %v1963_v14  ;;  %1420 = vmatmul.mubr.f32.vlgmr.msra.gmra.mrb[0].mxu1 %v1963_v14 }
  0xea   : > { %1722 = vmatpush1.bf16.msk.msra.mxu0 %vm2073_vm0, %v2068_v37  ;;  %1752 = vmatpush1.bf16.msk.msra.mxu1 %vm2093_vm1, %v2079_v40 }
  0xeb   : > { %787 = vmatprep.mubr.f32.mxu0 %v1887_v2  ;;  %1425 = vmatprep.mubr.f32.mxu1 %v1887_v2 }
  0xed   : > { %789 = vmatmul.mubr.f32.gmra.mrb[2].mxu0 %v1975_v21  ;;  %1427 = vmatmul.mubr.f32.gmra.mrb[2].mxu1 %v1975_v21 }
  0xee   : > { %794 = vmatprep.mubr.f32.mxu0 %v1887_v2  ;;  %1432 = vmatprep.mubr.f32.mxu1 %v1887_v2 }
  0xf1   : > { %796 = vmatmul.mubr.f32.gmra.mrb[4].mxu0 %v1999_v49  ;;  %1434 = vmatmul.mubr.f32.gmra.mrb[4].mxu1 %v1999_v49 }
  0xf2   : > { %801 = vmatprep.mubr.f32.mxu0 %v1887_v2  ;;  %1439 = vmatprep.mubr.f32.mxu1 %v1887_v2 }
  0xf5   : > { %803 = vmatmul.mubr.f32.gmra.mrb[6].mxu0 %v2012_v62  ;;  %1441 = vmatmul.mubr.f32.gmra.mrb[6].mxu1 %v2012_v62 }
  0xf6   : > { %877 = vmatprep.mubr.f32.mxu0 %v1887_v2  ;;  %1515 = vmatprep.mubr.f32.mxu1 %v1887_v2 }
  0xf9   : > { %879 = vmatmul.mubr.f32.vlgmr.msra.gmra.mrb[0].mxu0 %v1963_v14  ;;  %1517 = vmatmul.mubr.f32.vlgmr.msra.gmra.mrb[0].mxu1 %v1963_v14 }
  0xfa   : > { %884 = vmatprep.mubr.f32.mxu0 %v1887_v2  ;;  %1522 = vmatprep.mubr.f32.mxu1 %v1887_v2 }
  0xfd   : > { %886 = vmatmul.mubr.f32.gmra.mrb[2].mxu0 %v1975_v21  ;;  %1524 = vmatmul.mubr.f32.gmra.mrb[2].mxu1 %v1975_v21 }
  0xfe   : > { %891 = vmatprep.mubr.f32.mxu0 %v1887_v2  ;;  %1529 = vmatprep.mubr.f32.mxu1 %v1887_v2 }
 0x101   : > { %893 = vmatmul.mubr.f32.gmra.mrb[4].mxu0 %v1999_v49  ;;  %1531 = vmatmul.mubr.f32.gmra.mrb[4].mxu1 %v1999_v49 }
 0x102   : > { %898 = vmatprep.mubr.f32.mxu0 %v1887_v2  ;;  %1536 = vmatprep.mubr.f32.mxu1 %v1887_v2 }
 0x105   : > { %900 = vmatmul.mubr.f32.gmra.mrb[6].mxu0 %v2012_v62  ;;  %1538 = vmatmul.mubr.f32.gmra.mrb[6].mxu1 %v2012_v62 }
 0x1cc   : > { %v880_v14 = vpop.f32.mrb[0].mxu0  ;;  %v1518_v21 = vpop.f32.mrb[0].mxu1 }
 0x1cd   : > { %1544 = vst [vmem:[%s2284_s10] sm:$0xff] %v880_v14  ;;  %1546 = vst [vmem:[%s2284_s10 + $0x10] sm:$0xff] %v1518_v21  ;;  %v882_v2 = vpop.f32.mrb[1].mxu0  ;;  %v1520_v35 = vpop.f32.mrb[1].mxu1 }
 0x1ce   : > { %1545 = vst [vmem:[%s2284_s10 + $0x8] sm:$0xff] %v882_v2  ;;  %1547 = vst [vmem:[%s2284_s10 + $0x18] sm:$0xff] %v1520_v35 }
 0x1d0   : > { %v887_v48 = vpop.f32.mrb[2].mxu0  ;;  %v1525_v49 = vpop.f32.mrb[2].mxu1 }
 0x1d1   : > { %1548 = vst [vmem:[%s2284_s10 + $0x20] sm:$0xff] %v887_v48  ;;  %1550 = vst [vmem:[%s2284_s10 + $0x30] sm:$0xff] %v1525_v49  ;;  %v889_v61 = vpop.f32.mrb[3].mxu0  ;;  %v1527_v62 = vpop.f32.mrb[3].mxu1 }
 0x1d2   : > { %1549 = vst [vmem:[%s2284_s10 + $0x28] sm:$0xff] %v889_v61  ;;  %1551 = vst [vmem:[%s2284_s10 + $0x38] sm:$0xff] %v1527_v62 }
 0x1d4   : > { %v894_v10 = vpop.f32.mrb[4].mxu0  ;;  %v1532_v12 = vpop.f32.mrb[4].mxu1  ;;  %1566 = sbr.rel (!%p1935_p4) target bundleno = 483 (0x1e3), region = 36  ;;  %v1582_v28 = vld [vmem:[%s2284_s10] sm:$0xff] (%p1935_p4)  ;;  %v1586_v31 = vld [vmem:[%s2284_s10 + $0x10] sm:$0xff] (%p1935_p4) }
 0x1d5   : > { %1552 = vst [vmem:[%s2284_s10 + $0x40] sm:$0xff] %v894_v10  ;;  %1554 = vst [vmem:[%s2284_s10 + $0x50] sm:$0xff] %v1532_v12  ;;  %v896_v19 = vpop.f32.mrb[5].mxu0  ;;  %v1534_v23 = vpop.f32.mrb[5].mxu1  ;;  %v1584_v30 = vld [vmem:[%s2284_s10 + $0x8] sm:$0xff] (%p1935_p4)  ;;  %v1588_v32 = vld [vmem:[%s2284_s10 + $0x18] sm:$0xff] (%p1935_p4) }
 0x1d6   : > { %1553 = vst [vmem:[%s2284_s10 + $0x48] sm:$0xff] %v896_v19  ;;  %1555 = vst [vmem:[%s2284_s10 + $0x58] sm:$0xff] %v1534_v23 }
 0x1d7   : > { %1583 = vst [vmem:[%s1569_s17] sm:$0xff] (%p1935_p4), %v1582_v28  ;;  %1585 = vst [vmem:[%s1569_s17 + $0x8] sm:$0xff] (%p1935_p4), %v1584_v30 }
 0x1d8   : > { %v901_v26 = vpop.f32.mrb[6].mxu0  ;;  %v1539_v15 = vpop.f32.mrb[6].mxu1  ;;  %v1590_v33 = vld [vmem:[%s2284_s10 + $0x20] sm:$0xff] (%p1935_p4)  ;;  %1587 = vst [vmem:[%s1569_s17 + $0x10] sm:$0xff] (%p1935_p4), %v1586_v31  ;;  %1589 = vst [vmem:[%s1569_s17 + $0x18] sm:$0xff] (%p1935_p4), %v1588_v32  ;;  %v1594_v37 = vld [vmem:[%s2284_s10 + $0x30] sm:$0xff] (%p1935_p4) }
 0x1d9   : > { %1556 = vst [vmem:[%s2284_s10 + $0x60] sm:$0xff] %v901_v26  ;;  %1558 = vst [vmem:[%s2284_s10 + $0x70] sm:$0xff] %v1539_v15  ;;  %v903_v17 = vpop.f32.mrb[7].mxu0  ;;  %v1541_v27 = vpop.f32.mrb[7].mxu1  ;;  %v1592_v34 = vld [vmem:[%s2284_s10 + $0x28] sm:$0xff] (%p1935_p4)  ;;  %v1596_v38 = vld [vmem:[%s2284_s10 + $0x38] sm:$0xff] (%p1935_p4) }
 0x1da   : > { %1557 = vst [vmem:[%s2284_s10 + $0x68] sm:$0xff] %v903_v17  ;;  %1559 = vst [vmem:[%s2284_s10 + $0x78] sm:$0xff] %v1541_v27 }
 0x1db   : > { %1591 = vst [vmem:[%s1569_s17 + $0x40] sm:$0xff] %v1590_v33  ;;  %1593 = vst [vmem:[%s1569_s17 + $0x48] sm:$0xff] %v1592_v34 }
 0x1dc   : > { %v1598_v39 = vld [vmem:[%s2284_s10 + $0x40] sm:$0xff]  ;;  %1595 = vst [vmem:[%s1569_s17 + $0x50] sm:$0xff] %v1594_v37  ;;  %1597 = vst [vmem:[%s1569_s17 + $0x58] sm:$0xff] %v1596_v38  ;;  %v1602_v41 = vld [vmem:[%s2284_s10 + $0x50] sm:$0xff] }
 0x1dd   : > { %1599 = vst [vmem:[%s1569_s17 + $0x80] sm:$0xff] %v1598_v39  ;;  %v1600_v40 = vld [vmem:[%s2284_s10 + $0x48] sm:$0xff]  ;;  %v1604_v42 = vld [vmem:[%s2284_s10 + $0x58] sm:$0xff]  ;;  %1603 = vst [vmem:[%s1569_s17 + $0x90] sm:$0xff] %v1602_v41 }
 0x1de   : > { %1601 = vst [vmem:[%s1569_s17 + $0x88] sm:$0xff] %v1600_v40  ;;  %1605 = vst [vmem:[%s1569_s17 + $0x98] sm:$0xff] %v1604_v42 }
 0x1e0   : > { %v1606_v43 = vld [vmem:[%s2284_s10 + $0x60] sm:$0xff]  ;;  %v1610_v46 = vld [vmem:[%s2284_s10 + $0x70] sm:$0xff] }
 0x1e1   : > { %v1608_v44 = vld [vmem:[%s2284_s10 + $0x68] sm:$0xff]  ;;  %1607 = vst [vmem:[%s1569_s17 + $0xc0] sm:$0xff] %v1606_v43  ;;  %1611 = vst [vmem:[%s1569_s17 + $0xd0] sm:$0xff] %v1610_v46  ;;  %v1612_v4 = vld [vmem:[%s2284_s10 + $0x78] sm:$0xff] }
 0x1e2   : > { %1609 = vst [vmem:[%s1569_s17 + $0xc8] sm:$0xff] %v1608_v44  ;;  %1613 = vst [vmem:[%s1569_s17 + $0xd8] sm:$0xff] %v1612_v4 }
 0x1e3 PF: > { %p10_p8 = scmp.ge.s32.totalorder %s1925_s16, 4   ;;  %s2347_s12 = smov %s1880_s13 }
 0x1e4   : > { %s2348_s13 = smov %s1933_s19  ;;  %s2349_s14 = smov %s1925_s16 }
 0x1e5   :  { %12 = sbr.rel (!%p10_p8) target bundleno = 2 (0x2), region = 85 }

</bundles_post_ra>
